<compile_context>
chip_gen: v6e
topology: v6e:2x2x1
jax: 0.10.0
libtpu: 0.0.40
codegen_flags: <defaults>
</compile_context>

<pallas_src>
import functools

import jax
import jax.numpy as jnp
from jax.experimental import pallas as pl
from jax.experimental.pallas import tpu as pltpu

_EPS = 1e-5          # nn.BatchNorm1d default eps
_NEG_SLOPE = 0.01    # nn.LeakyReLU default negative_slope
_LANE = 128

# Sized against v7x (64 MiB physical VMEM, 32 MiB scoped default); v5e/v6e
# have 128 MiB physical, so anything fitting here fits there too.
_VMEM_BUDGET = 40 * 1024 * 1024
_VMEM_LIMIT = 48 * 1024 * 1024


def _round_up(n, m):
    return ((n + m - 1) // m) * m


def _bn_lrelu(y_lin, p_ref):
    """bias + BatchNorm1d (training-mode batch stats) + LeakyReLU, f32 math.

    p_ref rows: 0 = bias, 1 = gamma, 2 = beta.
    Two-pass centered variance (whole batch is resident per feature tile).
    NOTE: padded feature columns get var=0 -> rsqrt(eps) junk; they are sliced
    off in the wrapper (`out[:, :out_dim]`) -- do not remove that slice.
    """
    y = y_lin + p_ref[0:1, :]                                   # (B, TN)
    n = y.shape[0]
    mean = jnp.sum(y, axis=0, keepdims=True) * (1.0 / n)
    c = y - mean
    var = jnp.sum(c * c, axis=0, keepdims=True) * (1.0 / n)     # biased (PyTorch train norm)
    inv = jax.lax.rsqrt(var + _EPS)                             # EUP slot
    y_bn = c * (inv * p_ref[1:2, :]) + p_ref[2:3, :]
    return jnp.where(y_bn > 0, y_bn, _NEG_SLOPE * y_bn)


def _kernel_full_k(x_ref, w_ref, p_ref, o_ref):
    """grid = (feature tiles,): one dot over the full contraction per tile."""
    y = jnp.dot(x_ref[...], w_ref[...], preferred_element_type=jnp.float32)
    o_ref[...] = _bn_lrelu(y, p_ref).astype(o_ref.dtype)


def _kernel_k_tiled(x_ref, w_ref, p_ref, o_ref):
    """Fallback grid = (feature tiles, K tiles): accumulate into resident o_ref."""
    k = pl.program_id(1)

    @pl.when(k == 0)
    def _():
        o_ref[...] = jnp.zeros_like(o_ref)

    o_ref[...] += jnp.dot(x_ref[...], w_ref[...], preferred_element_type=jnp.float32)

    @pl.when(k == pl.num_programs(1) - 1)
    def _():
        o_ref[...] = _bn_lrelu(o_ref[...], p_ref).astype(o_ref.dtype)


def prepare_linear_mlp_params(w, b, gamma, beta):
    """One-time pad + cast of parameters. Keep OUT of the per-call hot path.

    w: [in_dim, out_dim] f32; b/gamma/beta: [out_dim] (or [1, out_dim]).
    Returns (w_p bf16 [in_p, out_p], params f32 [3, out_p]).
    """
    in_dim, out_dim = w.shape
    in_p = _round_up(in_dim, _LANE)
    out_p = _round_up(out_dim, _LANE)
    w_p = jnp.zeros((in_p, out_p), jnp.bfloat16)
    w_p = w_p.at[:in_dim, :out_dim].set(w.astype(jnp.bfloat16))
    params = jnp.zeros((3, out_p), jnp.float32)
    params = params.at[0, :out_dim].set(jnp.reshape(b, (-1,)).astype(jnp.float32))
    params = params.at[1, :out_dim].set(jnp.reshape(gamma, (-1,)).astype(jnp.float32))
    params = params.at[2, :out_dim].set(jnp.reshape(beta, (-1,)).astype(jnp.float32))
    return w_p, params


def _select_tn_full_k(B, in_p, out_p):
    """Largest lane-multiple feature tile (whole-K variant) that fits the
    v7x-sized VMEM budget; prefer an even tile count for v7x's two TCs."""
    fitting = []
    for tn in (512, 256, 128):          # descending; 128-multiples OK on v5e MXU
        if out_p % tn:
            continue
        need = (
            2 * in_p * tn * 2           # double-buffered bf16 w tile
            + 2 * B * in_p * 2          # resident bf16 x (conservatively x2)
            + 2 * B * tn * 4            # f32 output tile
            + 2 * 8 * tn * 4            # (3, tn) params pad to 8 sublanes
        )
        if need <= _VMEM_BUDGET:
            fitting.append((tn, out_p // tn))
    if not fitting:
        return None
    for tn, n_tiles in fitting:
        if n_tiles % 2 == 0:            # balance v7x's 2 TensorCores
            return tn
    return fitting[0][0]


@functools.partial(jax.jit, static_argnames=("out_dim",))
def linear_mlp(x, w_p, params, *, out_dim):
    """x: [B, in_dim]; w_p/params from prepare_linear_mlp_params()."""
    B, in_dim = x.shape
    in_p, out_p = w_p.shape

    # Only x is cast/padded per call (it is tiny: B x in_dim bf16).
    x_p = x.astype(jnp.bfloat16)
    if in_p != in_dim:
        x_p = jnp.pad(x_p, ((0, 0), (0, in_p - in_dim)))

    tn = _select_tn_full_k(B, in_p, out_p)
    if tn is not None:
        # Primary path: no K grid axis, x resident, lane-dense feature tiles.
        out = pl.pallas_call(
            _kernel_full_k,
            out_shape=jax.ShapeDtypeStruct((B, out_p), jnp.float32),
            grid_spec=pltpu.PrefetchScalarGridSpec(
                num_scalar_prefetch=0,
                grid=(out_p // tn,),
                in_specs=[
                    pl.BlockSpec((B, in_p), lambda j: (0, 0)),    # x: resident, no per-step DMA
                    pl.BlockSpec((in_p, tn), lambda j: (0, j)),   # w: full-K feature tile
                    pl.BlockSpec((3, tn), lambda j: (0, j)),      # fused bias/gamma/beta
                ],
                out_specs=pl.BlockSpec((B, tn), lambda j: (0, j)),
            ),
            compiler_params=pltpu.CompilerParams(
                dimension_semantics=("parallel",),
                vmem_limit_bytes=_VMEM_LIMIT,
            ),
        )(x_p, w_p, params)
    else:
        # Fallback for very large in_dim: tile the contraction axis too and
        # accumulate directly into the resident f32 output block.
        tn = 256 if out_p % 256 == 0 else 128
        tk = 512 if in_p % 512 == 0 else (256 if in_p % 256 == 0 else 128)
        out = pl.pallas_call(
            _kernel_k_tiled,
            out_shape=jax.ShapeDtypeStruct((B, out_p), jnp.float32),
            grid_spec=pltpu.PrefetchScalarGridSpec(
                num_scalar_prefetch=0,
                grid=(out_p // tn, in_p // tk),                   # K axis last
                in_specs=[
                    pl.BlockSpec((B, tk), lambda j, k: (0, k)),
                    pl.BlockSpec((tk, tn), lambda j, k: (k, j)),
                    pl.BlockSpec((3, tn), lambda j, k: (0, j)),
                ],
                out_specs=pl.BlockSpec((B, tn), lambda j, k: (0, j)),
            ),
            compiler_params=pltpu.CompilerParams(
                dimension_semantics=("parallel", "arbitrary"),
                vmem_limit_bytes=_VMEM_LIMIT,
            ),
        )(x_p, w_p, params)

    # Padded feature columns hold BN junk (var=0) -> must be sliced away.
    return out[:, :out_dim]


if __name__ == "__main__":
    B, in_dim, out_dim = 8, 256, 256

    key = jax.random.PRNGKey(0)
    kx, kw, kb, kg, kbeta = jax.random.split(key, 5)

    # Deterministic synthetic nn.Linear / nn.BatchNorm1d parameters.
    bound = 1.0 / jnp.sqrt(in_dim)
    w = jax.random.uniform(kw, (in_dim, out_dim), jnp.float32, -bound, bound)
    b = jax.random.uniform(kb, (out_dim,), jnp.float32, -bound, bound)
    gamma = 1.0 + 0.1 * jax.random.normal(kg, (out_dim,), jnp.float32)
    beta = 0.1 * jax.random.normal(kbeta, (out_dim,), jnp.float32)
    x = jax.random.normal(kx, (B, in_dim), jnp.float32)

    # One-time parameter prep (pad + bf16 cast) outside the hot path.
    w_p, params = prepare_linear_mlp_params(w, b, gamma, beta)

    out = linear_mlp(x, w_p, params, out_dim=out_dim)
    jax.block_until_ready(out)

    # Reference with the same bf16 matmul operands / f32 accumulation
    # (the exact computation the kernel performs).
    y = jnp.dot(
        x.astype(jnp.bfloat16), w.astype(jnp.bfloat16),
        preferred_element_type=jnp.float32,
    ) + b[None, :]
    mean = jnp.mean(y, axis=0, keepdims=True)
    var = jnp.mean((y - mean) ** 2, axis=0, keepdims=True)
    y_bn = (y - mean) / jnp.sqrt(var + _EPS) * gamma[None, :] + beta[None, :]
    ref = jnp.where(y_bn > 0, y_bn, _NEG_SLOPE * y_bn)
    assert jnp.allclose(out, ref, atol=2e-3, rtol=2e-3), (
        float(jnp.max(jnp.abs(out - ref)))
    )

    # Loose sanity check vs the full-f32 PyTorch-equivalent forward
    # (bf16 matmul operands are an intentional numerics change).
    y32 = x @ w + b[None, :]
    m32 = jnp.mean(y32, axis=0, keepdims=True)
    v32 = jnp.mean((y32 - m32) ** 2, axis=0, keepdims=True)
    yb32 = (y32 - m32) / jnp.sqrt(v32 + _EPS) * gamma[None, :] + beta[None, :]
    ref32 = jnp.where(yb32 > 0, yb32, _NEG_SLOPE * yb32)
    assert float(jnp.max(jnp.abs(out - ref32))) < 5e-2

    print("KERNEL_OK")
</pallas_src>

<mosaic_0001>
module attributes {stable_mosaic.version = 11 : i64} {
  func.func @_kernel_full_k(%arg0: i32, %arg1: memref<8x256xbf16, #tpu.memory_space<vmem>>, %arg2: memref<256x128xbf16, #tpu.memory_space<vmem>>, %arg3: memref<3x128xf32, #tpu.memory_space<vmem>>, %arg4: memref<8x128xf32, #tpu.memory_space<vmem>>) attributes {dimension_semantics = [#tpu.dimension_semantics<parallel>], iteration_bounds = array<i64: 2>, scalar_prefetch = 0 : i64, scratch_operands = 0 : i64, tpu.core_type = #tpu.core_type<tc>, window_params = [{pipeline_mode = #tpu.pipeline_mode<synchronous>, transform_indices = @transform_0, window_bounds = array<i64: 8, 256>}, {transform_indices = @transform_1, window_bounds = array<i64: 256, 128>}, {transform_indices = @transform_2, window_bounds = array<i64: 3, 128>}, {transform_indices = @transform_3, window_bounds = array<i64: 8, 128>}]} {
    %c0 = arith.constant 0 : index
    %c0_0 = arith.constant 0 : index
    %0 = vector.load %arg1[%c0, %c0_0] : memref<8x256xbf16, #tpu.memory_space<vmem>>, vector<8x256xbf16>
    %c0_1 = arith.constant 0 : index
    %c0_2 = arith.constant 0 : index
    %1 = vector.load %arg2[%c0_1, %c0_2] : memref<256x128xbf16, #tpu.memory_space<vmem>>, vector<256x128xbf16>
    %cst = arith.constant dense<0.000000e+00> : vector<8x128xf32>
    %2 = tpu.matmul %0, %1, %cst {dimension_numbers = #tpu.dot_dimension_numbers<[1], [0], [0], [1], [0, 0, 1, 1], [], []>} : vector<8x256xbf16>, vector<256x128xbf16>, vector<8x128xf32> -> vector<8x128xf32>
    %c0_3 = arith.constant 0 : index
    %c0_4 = arith.constant 0 : index
    %3 = vector.load %arg3[%c0_3, %c0_4] : memref<3x128xf32, #tpu.memory_space<vmem>>, vector<1x128xf32>
    %4 = vector.broadcast %3 : vector<1x128xf32> to vector<8x128xf32>
    %5 = arith.addf %2, %4 : vector<8x128xf32>
    %cst_5 = arith.constant dense<0.000000e+00> : vector<128xf32>
    %6 = vector.multi_reduction <add>, %5, %cst_5 [0] : vector<8x128xf32> to vector<128xf32>
    %7 = vector.shape_cast %6 : vector<128xf32> to vector<1x128xf32>
    %cst_6 = arith.constant 1.250000e-01 : f32
    %8 = vector.broadcast %cst_6 : f32 to vector<1x128xf32>
    %9 = arith.mulf %7, %8 : vector<1x128xf32>
    %10 = vector.broadcast %9 : vector<1x128xf32> to vector<8x128xf32>
    %11 = arith.subf %5, %10 : vector<8x128xf32>
    %12 = arith.mulf %11, %11 : vector<8x128xf32>
    %cst_7 = arith.constant dense<0.000000e+00> : vector<128xf32>
    %13 = vector.multi_reduction <add>, %12, %cst_7 [0] : vector<8x128xf32> to vector<128xf32>
    %14 = vector.shape_cast %13 : vector<128xf32> to vector<1x128xf32>
    %cst_8 = arith.constant 1.250000e-01 : f32
    %15 = vector.broadcast %cst_8 : f32 to vector<1x128xf32>
    %16 = arith.mulf %14, %15 : vector<1x128xf32>
    %cst_9 = arith.constant 9.99999974E-6 : f32
    %17 = vector.broadcast %cst_9 : f32 to vector<1x128xf32>
    %18 = arith.addf %16, %17 : vector<1x128xf32>
    %19 = math.rsqrt %18 : vector<1x128xf32>
    %c1 = arith.constant 1 : index
    %c0_10 = arith.constant 0 : index
    %20 = vector.load %arg3[%c1, %c0_10] : memref<3x128xf32, #tpu.memory_space<vmem>>, vector<1x128xf32>
    %21 = arith.mulf %19, %20 : vector<1x128xf32>
    %22 = vector.broadcast %21 : vector<1x128xf32> to vector<8x128xf32>
    %23 = arith.mulf %11, %22 : vector<8x128xf32>
    %c2 = arith.constant 2 : index
    %c0_11 = arith.constant 0 : index
    %24 = vector.load %arg3[%c2, %c0_11] : memref<3x128xf32, #tpu.memory_space<vmem>>, vector<1x128xf32>
    %25 = vector.broadcast %24 : vector<1x128xf32> to vector<8x128xf32>
    %26 = arith.addf %23, %25 : vector<8x128xf32>
    %cst_12 = arith.constant 0.000000e+00 : f32
    %27 = vector.broadcast %cst_12 : f32 to vector<8x128xf32>
    %28 = arith.cmpf ogt, %26, %27 : vector<8x128xf32>
    %cst_13 = arith.constant 0.00999999977 : f32
    %29 = vector.broadcast %cst_13 : f32 to vector<8x128xf32>
    %30 = arith.mulf %29, %26 : vector<8x128xf32>
    %31 = arith.select %28, %26, %30 : vector<8x128xi1>, vector<8x128xf32>
    %c0_14 = arith.constant 0 : index
    %c0_15 = arith.constant 0 : index
    %32 = vector.load %arg4[%c0_14, %c0_15] : memref<8x128xf32, #tpu.memory_space<vmem>>, vector<8x128xf32>
    tpu.vector_store %arg4[%c0_14, %c0_15], %31 {strides = array<i32>} : memref<8x128xf32, #tpu.memory_space<vmem>>, vector<8x128xf32>,
    return
  }
  func.func @transform_0(%arg0: i32) -> (i32, i32) {
    %c0_i32 = arith.constant 0 : i32
    %c0_i32_0 = arith.constant 0 : i32
    %c0_i32_1 = arith.constant 0 : i32
    return %c0_i32, %c0_i32_0 : i32, i32
  }
  func.func @transform_1(%arg0: i32) -> (i32, i32) {
    %c0_i32 = arith.constant 0 : i32
    %c0_i32_0 = arith.constant 0 : i32
    return %c0_i32, %arg0 : i32, i32
  }
  func.func @transform_2(%arg0: i32) -> (i32, i32) {
    %c0_i32 = arith.constant 0 : i32
    %c0_i32_0 = arith.constant 0 : i32
    return %c0_i32, %arg0 : i32, i32
  }
  func.func @transform_3(%arg0: i32) -> (i32, i32) {
    %c0_i32 = arith.constant 0 : i32
    %c0_i32_0 = arith.constant 0 : i32
    return %c0_i32, %arg0 : i32, i32
  }
}

</mosaic_0001>

<bundles_post_ra>
// kernel: linear_mlp.1
= control target key start
LH: loop header
LB: loop body
LE: loop exit
PB: predicated region body
PF: predicated region fallthrough
CT: control target
= control target key end

     0   :  { %8 = vsyncpa [#allocation3], 0  ;;  %s941_s0 = inlined_call_operand.vmem [shape: bf16[8,256], index: 0, kind: input, shape index: {}]   ;;  %s942_s1 = inlined_call_operand.hbm [shape: bf16[256,256], index: 1, kind: input, shape index: {}]   ;;  %s943_s2 = inlined_call_operand.vmem [shape: f32[3,256], index: 2, kind: input, shape index: {}]   ;;  %s944_s3 = inlined_call_operand.hbm [shape: f32[8,256], index: 3, kind: output, shape index: {}]  }
   0x1   :  { %10 = vsyncpa [#allocation3 + $0x1], 0 }
   0x2   :  { %11 = vsyncpa [#allocation4], 0 }
   0x3   :  { %13 = vsyncpa [#allocation4 + $0x1], 0  ;;  %s761_s12 = smov 0   ;;  %s763_s13 = smov 0  }
   0x4   :  { %s765_s14 = smov 0   ;;  %s767_s15 = smov 0  }
   0x5 LB: > { %s782_s16 = sadd.s32 4294967295, %s734_s15   ;;  %s518_s17 = sadd.s32 4294967294, %s734_s15   ;;  %s734_s15 = sphi %s767_s15, %s960_s15   ;;  %s730_s14 = sphi %s765_s14, %s959_s14   ;;  %s726_s13 = sphi %s763_s13, %s958_s13   ;;  %s722_s12 = sphi %s761_s12, %s957_s12  }
   0x6   : > { %s786_s18 = sadd.s32 1, %s734_s15   ;;  %s47_s19 = sadd.s32 1, %s730_s14 }
   0x7   : > { %s44_s20 = ssub.s32 %s734_s15, %s786_s18  ;;  %p54_p0 = scmp.ne.s32.totalorder %s730_s14, %s726_s13 }
   0x8   : > { %p45_p1 = scmp.eq.s32.totalorder %s44_s20, 0  ;;  %p55_p2 = scmp.eq.s32.totalorder %s734_s15, 0 }
   0x9   : > { %p60_p3 = scmp.ne.s32.totalorder %s726_s13, %s722_s12  ;;  %p61_p4 = scmp.eq.s32.totalorder %s782_s16, 0 }
   0xa   : > { %s798_s21 = scalar_select %p45_p1, %s730_s14, %s47_s19  }
   0xb   : > { %p800_p5 = por %p55_p2, %p54_p0  ;;  %p804_p6 = por %p61_p4, %p60_p3 }
   0xc   : > { %p110_p7 = scmp.eq.s32.totalorder %s782_s16, 1  ;;  %p116_p8 = scmp.eq.s32.totalorder %s518_s17, 1 }
   0xd   : > { %s948_s23 = scalar_select %p804_p6, 1, 0 }
   0xe   : > { %p585_p10 = scmp.lt.s32.totalorder %s734_s15, 2  ;;  %p811_p11 = por %p110_p7, %p54_p0 }
   0xf   : > { %p815_p12 = por %p116_p8, %p60_p3  ;;  %s139_s26 = sand.u32 1, %s730_s14  }
  0x10   : > { %s949_s24 = scalar_select %p811_p11, 1, 0 }
  0x11   : > { %s950_s25 = scalar_select %p815_p12, 1, 0 }
  0x12   : > { %s522_s27 = sshll.u32 %s734_s15, 6  ;;  %s521_s28 = sshll.u32 %s139_s26, 7 }
  0x13   : > { %s824_s4 = scalar_lea.hbm %s942_s1, %s522_s27  ;;  %s143_s5 = scalar_lea.vmem [#allocation2], %s521_s28 }
  0x14   : > { %s149_s6 = sshll.u32 %s143_s5, 4  ;;  %p828_p13 = pnand %p585_p10, %p800_p5  ;;  %s832_s6 = int_to_ptr.vmem [resolvable:$true] %s149_s6 }
  0x15   : > { %s835_s8 = scalar_lea.sflag [#allocation3], %s139_s26  ;;  %s642_s9 = scalar_lea.hbm %s824_s4, 2048 }
  0x16   : > { %p643_p1 = scmp.ne.s32.totalorder %s824_s4, %s642_s9  ;;  %p644_p2 = pneg %p828_p13 }
  0x17   : > { %s647_s17 = scalar_lea.hbm %s942_s1, 4096  ;;  %p648_p5 = scmp.lt.s32.totalorder %s824_s4, %s942_s1 }
  0x18   : > { %p645_p3 = pnand %p644_p2, %p643_p1  ;;  %p649_p7 = scmp.lt.s32.totalorder %s647_s17, %s642_s9 }
  0x1a   : > { %p646_p4 = pneg %p645_p3  ;;  %p650_p8 = por %p649_p7, %p648_p5 }
  0x1c   : > { %p651_p10 = pnand %p650_p8, %p646_p4 }
  0x1e   : > { %654 = shalt.err (!%p651_p10)
}
  0x1f   : > { %s655_s22 = scalar_lea.vmem %s832_s6, 2048  ;;  %s736_s26 = smov [#allocation2]  }
  0x20   : > { %p656_p9 = scmp.ne.s32.totalorder %s832_s6, %s655_s22  ;;  %s660_s27 = sshll.u32 %s736_s26, 4  ;;  %s661_s27 = int_to_ptr.vmem [resolvable:$false] %s660_s27 }
  0x21   : > { %s662_s28 = scalar_lea.vmem %s661_s27, 4096  ;;  %p663_p3 = scmp.lt.s32.totalorder %s832_s6, %s661_s27 }
  0x22   : > { %p658_p0 = pnand %p656_p9, %p644_p2  ;;  %p664_p12 = scmp.lt.s32.totalorder %s662_s28, %s655_s22 }
  0x24   : > { %p659_p1 = pneg %p658_p0  ;;  %p665_p11 = por %p664_p12, %p663_p3 }
  0x26   : > { %p666_p6 = pnand %p665_p11, %p659_p1 }
  0x28   : > { %669 = shalt.err (!%p666_p6)
}
  0x29   : > { %s737_s29 = smov 128   ;;  %s738_s30 = smov 64  }
  0x2a   : > { %s739_s5 = smov 4   ;;  %p164_p9 = scmp.lt.s32.totalorder %s734_s15, 3 }
  0x2b   : > { %580 = dma.hbm_to_vmem [thread:$0]  (!%p828_p13), %s824_s4, 2048, %s832_s6, %s835_s8, %s737_s29, %s738_s30, %s739_s5  }
  0x2c   : > { %p952_p0 = scmp.ge.s32.totalorder %s734_s15, 1 }
  0x2e   : > { %p165_p2 = pnand %p952_p0, %p164_p9 }
  0x2f   : > { %s860_s9 = sand.u32 (!%p165_p2), 1, %s726_s13   ;;  %p953_p6 = scmp.ne.s32.totalorder (!%p165_p2), %s948_s23, 0 }
  0x30   : > { %168 = sbr.rel (%p165_p2) target bundleno = 358 (0x166), region = 32  ;;  %s524_s10 = sshll.u32 (!%p165_p2), %s860_s9, 7 }
  0x31   : > { %s171_s11 = scalar_lea.sflag (!%p165_p2), [#allocation3], %s860_s9  ;;  %s864_s17 = scalar_lea.vmem (!%p165_p2), [#allocation2], %s524_s10 }
  0x35   : > { %713 = dma.done.wait (%p953_p6), %s171_s11, 2048  }
  0x36   : > { %715 = vsyncadd (%p953_p6), %s171_s11, 4294965248  ;;  %v622_v0 = vld [vmem:[%s864_s17 + $0x78] sm:$0xff]   ;;  %v624_v2 = vld [vmem:[%s864_s17 + $0x70] sm:$0xff]   ;;  %p201_p11 = scmp.lt.s32.totalorder %s782_s16, 1  ;;  %v407_v43 = vlaneseq  ;;  %s525_s22 = sshll.u32 %s860_s9, 3 }
  0x37   : > { %v623_v1 = vld [vmem:[%s864_s17 + $0x38] sm:$0xff]   ;;  %551 = vmatprep.subr.bf16.mxu0 %v622_v0  ;;  %v625_v3 = vld [vmem:[%s864_s17 + $0x30] sm:$0xff]   ;;  %v626_v4 = vld [vmem:[%s864_s17 + $0x68] sm:$0xff]   ;;  %s548_s26 = sshll.u32 %s782_s16, 7  ;;  %s200_s27 = scalar_lea.vmem [#allocation5], %s525_s22 }
  0x38   : > { %552 = vmatpush3.bf16.msra.mxu0 %v623_v1  ;;  %v627_v5 = vld [vmem:[%s864_s17 + $0x28] sm:$0xff]   ;;  %v628_v6 = vld [vmem:[%s864_s17 + $0x60] sm:$0xff]   ;;  %v630_v8 = vld [vmem:[%s864_s17 + $0x58] sm:$0xff]   ;;  %s202_s6 = scalar_select %p201_p11, %s782_s16, 1  ;;  %v408_v44 = vshrl.u32 %v407_v43, 7 }
  0x39   : > { %553 = vmatprep.subr.bf16.mxu0 %v624_v2  ;;  %v629_v7 = vld [vmem:[%s864_s17 + $0x20] sm:$0xff]   ;;  %v631_v9 = vld [vmem:[%s864_s17 + $0x18] sm:$0xff]   ;;  %v632_v10 = vld [vmem:[%s864_s17 + $0x50] sm:$0xff]   ;;  %s436_s28 = sshll.u32 %s200_s27, 4  ;;  %s904_s5 = scalar_lea.hbm %s944_s3, %s548_s26  ;;  %s437_s28 = int_to_ptr.vmem [resolvable:$true] %s436_s28 }
  0x3a   : > { %v206_v11 = vld [vmem:[%s941_s0] sm:$0xff]  ;;  %v633_v13 = vld [vmem:[%s864_s17 + $0x10] sm:$0xff]   ;;  %v634_v14 = vld [vmem:[%s864_s17 + $0x48] sm:$0xff]   ;;  %s526_s7 = sshll.u32 %s202_s6, 2  ;;  %v409_v46 = vsub.s32 0, %v408_v44  ;;  %s423_s10 = scalar_lea.sflag [#allocation4], %s860_s9 }
  0x3b   : > { %v529_v12 = vcombine.high %v206_v11, %v206_v11  ;;  %v635_v15 = vld [vmem:[%s864_s17 + $0x8] sm:$0xff]   ;;  %v636_v16 = vld [vmem:[%s864_s17 + $0x40] sm:$0xff]   ;;  %v528_v18 = vcombine.low %v206_v11, %v206_v11  ;;  %s894_s20 = scalar_lea.vmem %s943_s2, %s526_s7  ;;  %s670_s11 = scalar_lea.vmem %s437_s28, 128 }
  0x3c   : > { %554 = vmatpush3.bf16.msra.mxu0 %v625_v3  ;;  %v637_v17 = vld [vmem:[%s864_s17] sm:$0xff]   ;;  %p671_p12 = scmp.ne.s32.totalorder %s437_s28, %s670_s11  ;;  %p954_p13 = scmp.ne.s32.totalorder %s949_s24, 0 }
  0x3d   : > { %555 = vmatprep.subr.bf16.mxu0 %v626_v4  ;;  %379 = vmatprep.mubr.bf16.mxu0 %v529_v12  ;;  %v527_v20 = vld [vmem:[%s894_s20] ss:$0 sm:$0xff]  ;;  %v405_v45 = vld [vmem:[%s894_s20 + $0x1] sm:$0x1]  ;;  %v546_v50 = vld [vmem:[%s894_s20 + $0x2] ss:$0 sm:$0xff] }
  0x3e   : > { %p672_p4 = pnand %p671_p12, %p954_p13  ;;  %s740_s17 = smov [#allocation5]  }
  0x3f   : > { %s674_s16 = sshll.u32 %s740_s17, 4  ;;  %s675_s16 = int_to_ptr.vmem [resolvable:$false] %s674_s16 }
  0x40   : > { %556 = vmatpush3.bf16.msra.mxu0 %v627_v5  ;;  %p673_p5 = pneg %p672_p4  ;;  %s676_s23 = scalar_lea.vmem %s675_s16, 256 }
  0x41   : > { %557 = vmatprep.subr.bf16.mxu0 %v628_v6  ;;  %p677_p7 = scmp.lt.s32.totalorder %s437_s28, %s675_s16  ;;  %p678_p8 = scmp.lt.s32.totalorder %s676_s23, %s670_s11 }
  0x43   : > { %p679_p10 = por %p678_p8, %p677_p7 }
  0x44   : > { %558 = vmatpush3.bf16.msra.mxu0 %v629_v7 }
  0x45   : > { %559 = vmatprep.subr.bf16.mxu0 %v630_v8  ;;  %p680_p1 = pnand %p679_p10, %p673_p5 }
  0x48   : > { %560 = vmatpush3.bf16.msra.mxu0 %v631_v9 }
  0x49   : > { %561 = vmatprep.subr.bf16.mxu0 %v632_v10 }
  0x4c   : > { %562 = vmatpush3.bf16.msra.mxu0 %v633_v13 }
  0x4d   : > { %563 = vmatprep.subr.bf16.mxu0 %v634_v14 }
  0x50   : > { %564 = vmatpush3.bf16.msra.mxu0 %v635_v15 }
  0x51   : > { %565 = vmatprep.subr.bf16.mxu0 %v636_v16 }
  0x54   : > { %566 = vmatpush3.bf16.msra.mxu0 %v637_v17 }
  0x57   : > { %380 = vmatmul.mubr.bf16.vlgmr.msra.gmra.mxu0 %v528_v18 }
 0x117   : > { %v567_v19 = vpop.f32.mrf.mxu0 }
 0x119   : > { %v568_v21 = vpop.f32.mrf.mxu0 }
 0x11a   : > { %v569_v22 = vadd.f32 %v568_v21, %v567_v19 }
 0x11b   : > { %v570_v23 = vpop.f32.mrf.mxu0 }
 0x11c   : > { %v382_v24 = vadd.f32 %v569_v22, %v527_v20 }
 0x11d   : > { %v571_v25 = vpop.f32.mrf.mxu0 }
 0x11e   : > { %v387_v26 = vrot.slane %v382_v24, 4 }
 0x120   : > { %v388_v27 = vadd.f32 %v387_v26, %v382_v24 }
 0x122   : > { %v389_v28 = vrot.slane %v388_v27, 2 }
 0x124   : > { %v390_v29 = vadd.f32 %v389_v28, %v388_v27 }
 0x126   : > { %v391_v30 = vrot.slane %v390_v29, 1 }
 0x128   : > { %v392_v31 = vadd.f32 %v391_v30, %v390_v29 }
 0x12a   : > { %v393_v32 = vmul.f32 0.125, %v392_v31 }
 0x12c   : > { %v394_v33 = vsub.f32 %v382_v24, %v393_v32 }
 0x12e   : > { %v395_v34 = vmul.f32 %v394_v33, %v394_v33 }
 0x130   : > { %v396_v35 = vrot.slane %v395_v34, 4 }
 0x132   : > { %v397_v36 = vadd.f32 %v396_v35, %v395_v34 }
 0x134   : > { %v398_v37 = vrot.slane %v397_v36, 2 }
 0x136   : > { %v399_v38 = vadd.f32 %v398_v37, %v397_v36 }
 0x138   : > { %v400_v39 = vrot.slane %v399_v38, 1 }
 0x13a   : > { %v401_v40 = vadd.f32 %v400_v39, %v399_v38 }
 0x13c   : > { %v402_v41 = vmul.f32 0.125, %v401_v40 }
 0x13e   : > { %v403_v42 = vadd.f32 1e-05, %v402_v41 }
 0x140   : > { %640 = vrsqrt.f32 %v403_v42 }
 0x14d   : > { %v641_v47 = vpop.eup %640 }
 0x14e   : > { %v406_v48 = vmul.f32 %v641_v47, %v405_v45 }
 0x150   : > { %v410_v49 = vrot.slane %v406_v48, %v409_v46 }
 0x152   : > { %v411_v51 = vmul.f32 %v410_v49, %v394_v33 }
 0x154   : > { %v417_v52 = vadd.f32 %v546_v50, %v411_v51 }
 0x156   : > { %vm418_vm0 = vcmp.gt.f32.partialorder %v417_v52, 0.0  ;;  %v419_v53 = vmul.f32 0.01, %v417_v52 }
 0x158   : > { %v420_v54 = vsel %vm418_vm0, %v417_v52, %v419_v53 }
 0x159   : > { %421 = vst [vmem:[%s200_s27] sm:$0xff] %v420_v54 }
 0x15a   : > { %683 = shalt.err (!%p680_p1)
}
 0x15b   : > { %s684_s4 = scalar_lea.hbm %s904_s5, 128  ;;  %s688_s7 = scalar_lea.hbm %s944_s3, 256 }
 0x15c   : > { %p685_p3 = scmp.ne.s32.totalorder %s904_s5, %s684_s4  ;;  %p689_p2 = scmp.lt.s32.totalorder %s904_s5, %s944_s3 }
 0x15d   : > { %p690_p6 = scmp.lt.s32.totalorder %s688_s7, %s684_s4 }
 0x15e   : > { %p686_p9 = pnand %p685_p3, %p954_p13 }
 0x15f   : > { %p691_p11 = por %p690_p6, %p689_p2 }
 0x160   : > { %p687_p0 = pneg %p686_p9 }
 0x162   : > { %p692_p12 = pnand %p691_p11, %p687_p0 }
 0x164   : > { %695 = shalt.err (!%p692_p12)
}
 0x165   : > { %575 = dma.vmem_to_hbm [thread:$0]  (%p954_p13), %s437_s28, 128, %s904_s5, %s423_s10  }
 0x166 PF: > { %s448_s20 = sand.u32 1, %s722_s12   ;;  %p955_p4 = scmp.ne.s32.totalorder %s950_s25, 0 }
 0x167   : > { %p956_p5 = scmp.ge.s32.totalorder %s734_s15, 2  ;;  %s449_s22 = scalar_lea.sflag [#allocation4], %s448_s20 }
 0x169   : > { %p582_p7 = pnand %p956_p5, %p955_p4 }
 0x16b   : > { %p583_p8 = pneg %p582_p7 }
 0x16d   : > { %717 = dma.done.wait (%p583_p8), %s449_s22, 128  }
 0x16e   : > { %719 = vsyncadd (%p583_p8), %s449_s22, 4294967168  ;;  %p16_p10 = scmp.ge.s32.totalorder %s786_s18, 4   ;;  %s957_s12 = smov %s726_s13 }
 0x16f   : > { %s958_s13 = smov %s730_s14  ;;  %s959_s14 = smov %s798_s21 }
 0x170   : > { %s960_s15 = smov %s786_s18  ;;  %18 = sbr.rel (!%p16_p10) target bundleno = 5 (0x5), region = 80 }
 0x175   :  { %454 = vsyncpa [#allocation3], 1 }
 0x176   :  { %456 = vsyncpa [#allocation3 + $0x1], 1 }
 0x177   :  { %457 = vsyncpa [#allocation4], 1 }
 0x178   :  { %459 = vsyncpa [#allocation4 + $0x1], 1 }

</bundles_post_ra>
